<compile_context>
chip_gen: v7x
topology: tpu7x:2x2x1
jax: 0.10.0
libtpu: 0.0.40
codegen_flags: <defaults>
</compile_context>

<pallas_src>
import functools

import numpy as np

import jax
import jax.numpy as jnp
from jax.experimental import pallas as pl
from jax.experimental.pallas import tpu as pltpu


_VPU_K_MAX = 32         # contraction dims <= this use a VPU FMA loop (no MXU)
_SIXTH = 1.0 / 6.0


# ---------------------------------------------------------------- activations
def _relu6(x):
    return jnp.clip(x, 0.0, 6.0)


def _act(x, activation):
    if activation == 'RE':
        return _relu6(x)
    return x * _relu6(x + 3.0) * _SIXTH          # hswish


# -------------------------------------------------------- small matmul helper
def _mm(w_t, x):
    """(Co, K) @ (K, M) -> (Co, M) in f32.

    Small contraction dims run as a VPU broadcast-FMA loop (a K=4..16 matmul
    would use <1% of an MXU tile); large ones fall back to the MXU.
    """
    k_dim = w_t.shape[1]
    if k_dim <= _VPU_K_MAX:
        acc = jnp.zeros((w_t.shape[0], x.shape[1]), jnp.float32)
        for k in range(k_dim):
            acc = acc + w_t[:, k:k + 1] * x[k:k + 1, :]
        return acc
    return jnp.dot(w_t, x, preferred_element_type=jnp.float32)


# ------------------------------------------------------ fused bottleneck body
def _bottleneck_kernel(*refs, K, W, HW, HWo, pw, stride, activation, use_se,
                       add_res):
    *in_refs, o_ref = refs
    x_ref, mask_ref, w1_ref, b1_ref, w2_ref, b2_ref = in_refs[:6]
    i = 6
    if use_se:
        sew1_ref, seb1_ref, sew2_ref, seb2_ref = in_refs[i:i + 4]
        i += 4
    w3_ref, b3_ref = in_refs[i:i + 2]
    i += 2
    sel_ref = in_refs[i] if stride > 1 else None

    pad = (K - 1) // 2
    x_ext = x_ref[0]                                    # (Cin, HW + 2*pw)

    # ---- conv1: 1x1 expand + folded BN + activation ------------------------
    # Halo columns hold garbage (act(b1)); every read of them is zeroed by the
    # border masks below.
    x1_ext = _act(_mm(w1_ref[...], x_ext) + b1_ref[...], activation)

    # ---- conv2: depthwise KxK via shifted lane-dense views + border masks --
    acc = jnp.zeros((x1_ext.shape[0], HW), jnp.float32)
    for dh in range(K):
        for dw in range(K):
            t = dh * K + dw
            start = pw + (dh - pad) * W + (dw - pad)
            sl = x1_ext[:, start:start + HW]            # (exp, HW)
            w_col = w2_ref[:, t:t + 1]                  # (exp, 1), BN folded
            if dh == pad and dw == pad:                 # center tap: no mask
                acc = acc + sl * w_col
            else:
                acc = acc + (sl * mask_ref[t:t + 1, :]) * w_col
    x2 = _act(acc + b2_ref[...], activation)            # (exp, HW)

    # stride > 1: subsample the full-resolution result (gather-as-matmul).
    if stride > 1:
        x2 = jnp.dot(x2, sel_ref[...], preferred_element_type=jnp.float32)

    # ---- SE block: VPU multiplies + lane/sublane reductions, no MXU --------
    if use_se:
        pooled = jnp.sum(x2, axis=1, keepdims=True) * (1.0 / HWo)    # (exp,1)
        h = jnp.sum(sew1_ref[...] * pooled, axis=0, keepdims=True)   # (1,red)
        h = jnp.maximum(h + seb1_ref[...], 0.0)
        s = jnp.sum(sew2_ref[...] * h, axis=1, keepdims=True)        # (exp,1)
        s = _relu6(s + seb2_ref[...] + 3.0) * _SIXTH                 # h-sigm.
        x2 = x2 * s

    # ---- conv3: 1x1 project + bias (+ residual from the loaded input) ------
    y = _mm(w3_ref[...], x2) + b3_ref[...]              # (Cout, HWo)
    if add_res:
        y = y + x_ext[:, pw:pw + HW]
    o_ref[0] = y.astype(o_ref.dtype)


# -------------------------------------------------------------------- wrapper
def bottleneck_forward(x_nchw, p, *, stride, activation, use_se, ksize):
    N, Cin, H, W = x_nchw.shape
    exp_size = p['w1'].shape[1]
    Cout = p['w3'].shape[1]
    pad = (ksize - 1) // 2
    Ho = (H + 2 * pad - ksize) // stride + 1
    Wo = (W + 2 * pad - ksize) // stride + 1
    HW, HWo = H * W, Ho * Wo
    pw = pad * (W + 1)                 # flat halo so every tap is a slice
    HWext = HW + 2 * pw
    add_res = (stride == 1 and Cin == Cout)

    # Channels-on-sublanes / flat-spatial-on-lanes: NCHW -> kernel layout is a
    # reshape plus a tiny flat halo pad on the raw input (no transposes).
    x_flat = jnp.pad(x_nchw.reshape(N, Cin, HW), ((0, 0), (0, 0), (pw, pw)))

    # Fold BN scales into conv weights; lay weights out as (out_ch, ...)
    # columns that broadcast directly against the (C, H*W) activations.
    w1_t = (p['w1'] * p['s1']).T                        # (exp, Cin)
    b1_c = p['b1'].reshape(exp_size, 1)
    w2_k = (p['w2'] * p['s2'].reshape(1, 1, exp_size)
            ).reshape(ksize * ksize, exp_size).T        # (exp, K*K)
    b2_c = p['b2'].reshape(exp_size, 1)
    w3_t = p['w3'].T                                    # (Cout, exp)
    b3_c = p['b3'].reshape(Cout, 1)

    # Per-tap zero-padding masks (K*K, H*W), computed host-side.
    hh, ww = np.divmod(np.arange(HW, dtype=np.int32), W)
    masks = np.zeros((ksize * ksize, HW), np.float32)
    for dh in range(ksize):
        for dw in range(ksize):
            oh, ow = dh - pad, dw - pad
            valid = ((hh + oh >= 0) & (hh + oh < H) &
                     (ww + ow >= 0) & (ww + ow < W))
            masks[dh * ksize + dw] = valid
    masks = jnp.asarray(masks)

    inputs = [x_flat, masks, w1_t, b1_c, w2_k, b2_c]
    in_specs = [
        pl.BlockSpec((1, Cin, HWext), lambda n: (n, 0, 0)),
        pl.BlockSpec((ksize * ksize, HW), lambda n: (0, 0)),
        pl.BlockSpec((exp_size, Cin), lambda n: (0, 0)),
        pl.BlockSpec((exp_size, 1), lambda n: (0, 0)),
        pl.BlockSpec((exp_size, ksize * ksize), lambda n: (0, 0)),
        pl.BlockSpec((exp_size, 1), lambda n: (0, 0)),
    ]

    if use_se:
        red = p['se_w1'].shape[1]
        inputs += [p['se_w1'], p['se_b1'], p['se_w2'].T,
                   p['se_b2'].reshape(exp_size, 1)]
        in_specs += [
            pl.BlockSpec((exp_size, red), lambda n: (0, 0)),
            pl.BlockSpec((1, red), lambda n: (0, 0)),
            pl.BlockSpec((exp_size, red), lambda n: (0, 0)),
            pl.BlockSpec((exp_size, 1), lambda n: (0, 0)),
        ]

    inputs += [w3_t, b3_c]
    in_specs += [
        pl.BlockSpec((Cout, exp_size), lambda n: (0, 0)),
        pl.BlockSpec((Cout, 1), lambda n: (0, 0)),
    ]

    if stride > 1:
        rows = ((np.arange(Ho) * stride)[:, None] * W
                + (np.arange(Wo) * stride)[None, :]).reshape(-1)
        sel = np.zeros((HW, HWo), np.float32)
        sel[rows, np.arange(HWo)] = 1.0
        inputs.append(jnp.asarray(sel))
        in_specs.append(pl.BlockSpec((HW, HWo), lambda n: (0, 0)))

    kern = functools.partial(
        _bottleneck_kernel, K=ksize, W=W, HW=HW, HWo=HWo, pw=pw,
        stride=stride, activation=activation, use_se=use_se, add_res=add_res)

    y = pl.pallas_call(
        kern,
        out_shape=jax.ShapeDtypeStruct((N, Cout, HWo), jnp.float32),
        grid=(N,),
        in_specs=in_specs,
        out_specs=pl.BlockSpec((1, Cout, HWo), lambda n: (n, 0, 0)),
        compiler_params=pltpu.CompilerParams(
            dimension_semantics=("parallel",)),
    )(*inputs)

    return y.reshape(N, Cout, Ho, Wo)


# ------------------------------------------------------------------ parameters
def init_params(key, in_ch, out_ch, exp_size, ksize):
    eps = 1e-5
    ks = jax.random.split(key, 16)
    red = exp_size // 4

    def bn_fold(kg, kb, conv_bias):
        gamma = 1.0 + 0.1 * jax.random.normal(kg, conv_bias.shape, jnp.float32)
        beta = 0.1 * jax.random.normal(kb, conv_bias.shape, jnp.float32)
        r_mean = jnp.zeros_like(conv_bias)
        r_var = jnp.ones_like(conv_bias)
        scale = gamma / jnp.sqrt(r_var + eps)
        bias = beta + (conv_bias - r_mean) * scale
        return scale, bias

    # conv1: 1x1, in_ch -> exp_size
    w1 = 0.1 * jax.random.normal(ks[0], (in_ch, exp_size), jnp.float32)
    cb1 = 0.1 * jax.random.normal(ks[1], (exp_size,), jnp.float32)
    s1, b1 = bn_fold(ks[2], ks[3], cb1)

    # conv2: depthwise ksize x ksize on exp_size channels
    w2 = 0.1 * jax.random.normal(ks[4], (ksize, ksize, exp_size), jnp.float32)
    cb2 = 0.1 * jax.random.normal(ks[5], (exp_size,), jnp.float32)
    s2, b2 = bn_fold(ks[6], ks[7], cb2)

    # SE block
    se_w1 = 0.1 * jax.random.normal(ks[8], (exp_size, red), jnp.float32)
    se_b1 = 0.1 * jax.random.normal(ks[9], (red,), jnp.float32)
    se_w2 = 0.1 * jax.random.normal(ks[10], (red, exp_size), jnp.float32)
    se_b2 = 0.1 * jax.random.normal(ks[11], (exp_size,), jnp.float32)

    # conv3: 1x1, exp_size -> out_ch (bias, no BN, no activation)
    w3 = 0.1 * jax.random.normal(ks[12], (exp_size, out_ch), jnp.float32)
    b3 = 0.1 * jax.random.normal(ks[13], (out_ch,), jnp.float32)

    return dict(
        w1=w1, s1=s1.reshape(1, -1), b1=b1.reshape(1, -1),
        w2=w2, s2=s2.reshape(1, -1), b2=b2.reshape(1, -1),
        se_w1=se_w1, se_b1=se_b1.reshape(1, -1),
        se_w2=se_w2, se_b2=se_b2.reshape(1, -1),
        w3=w3, b3=b3.reshape(1, -1),
    )


# --------------------------------------------------------- pure-JAX reference
def reference_forward(x_nchw, p, *, stride, activation, use_se, ksize):
    N, Cin, H, W = x_nchw.shape
    Cout = p['w3'].shape[1]
    x = jnp.transpose(x_nchw, (0, 2, 3, 1))

    x1 = _act(jnp.einsum('nhwc,ce->nhwe', x, p['w1']) * p['s1'] + p['b1'],
              activation)

    pad = (ksize - 1) // 2
    xp = jnp.pad(x1, ((0, 0), (pad, pad), (pad, pad), (0, 0)))
    Ho = (H + 2 * pad - ksize) // stride + 1
    Wo = (W + 2 * pad - ksize) // stride + 1
    acc = jnp.zeros((N, Ho, Wo, p['w1'].shape[1]), jnp.float32)
    for dh in range(ksize):
        for dw in range(ksize):
            acc = acc + xp[:, dh:dh + (Ho - 1) * stride + 1:stride,
                           dw:dw + (Wo - 1) * stride + 1:stride, :] \
                        * p['w2'][dh, dw]
    x2 = _act(acc * p['s2'] + p['b2'], activation)

    if use_se:
        pooled = jnp.mean(x2, axis=(1, 2))
        h = jnp.maximum(pooled @ p['se_w1'] + p['se_b1'], 0.0)
        s = _relu6(h @ p['se_w2'] + p['se_b2'] + 3.0) / 6.0
        x2 = x2 * s[:, None, None, :]

    y = jnp.einsum('nhwe,eo->nhwo', x2, p['w3']) + p['b3']
    if stride == 1 and Cin == Cout:
        y = y + x
    return jnp.transpose(y, (0, 3, 1, 2))


# ------------------------------------------------------------------------ main
if __name__ == "__main__":
    N, H, W = 2, 16, 16
    configs = [
        # BottleNeck(4, 4, stride=1, exp_size=8, 'HS', use_se=True, ksize=3)
        dict(Cin=4, Cout=4, exp=8, stride=1, ksize=3, activation='HS',
             use_se=True),
        # exercises stride>1 / no-SE / ReLU6 / no-residual branches
        dict(Cin=4, Cout=8, exp=16, stride=2, ksize=5, activation='RE',
             use_se=False),
    ]

    key = jax.random.PRNGKey(0)
    for cfg in configs:
        key, kx, kp = jax.random.split(key, 3)
        x = jax.random.normal(kx, (N, cfg['Cin'], H, W), jnp.float32)
        params = init_params(kp, cfg['Cin'], cfg['Cout'], cfg['exp'],
                             cfg['ksize'])

        out = bottleneck_forward(x, params, stride=cfg['stride'],
                                 activation=cfg['activation'],
                                 use_se=cfg['use_se'], ksize=cfg['ksize'])
        out = jax.block_until_ready(out)

        ref = reference_forward(x, params, stride=cfg['stride'],
                                activation=cfg['activation'],
                                use_se=cfg['use_se'], ksize=cfg['ksize'])

        pad = (cfg['ksize'] - 1) // 2
        Ho = (H + 2 * pad - cfg['ksize']) // cfg['stride'] + 1
        Wo = (W + 2 * pad - cfg['ksize']) // cfg['stride'] + 1
        assert out.shape == (N, cfg['Cout'], Ho, Wo), out.shape
        max_err = float(jnp.max(jnp.abs(out - ref)))
        assert jnp.allclose(out, ref, atol=1e-4, rtol=1e-4), max_err

    print("KERNEL_OK")
</pallas_src>

<mosaic_0001>
module attributes {stable_mosaic.version = 11 : i64} {
  func.func @_bottleneck_kernel(%arg0: i32, %arg1: memref<1x4x290xf32, #tpu.memory_space<vmem>>, %arg2: memref<9x256xf32, #tpu.memory_space<vmem>>, %arg3: memref<8x4xf32, #tpu.memory_space<vmem>>, %arg4: memref<8x1xf32, #tpu.memory_space<vmem>>, %arg5: memref<8x9xf32, #tpu.memory_space<vmem>>, %arg6: memref<8x1xf32, #tpu.memory_space<vmem>>, %arg7: memref<8x2xf32, #tpu.memory_space<vmem>>, %arg8: memref<1x2xf32, #tpu.memory_space<vmem>>, %arg9: memref<8x2xf32, #tpu.memory_space<vmem>>, %arg10: memref<8x1xf32, #tpu.memory_space<vmem>>, %arg11: memref<4x8xf32, #tpu.memory_space<vmem>>, %arg12: memref<4x1xf32, #tpu.memory_space<vmem>>, %arg13: memref<1x4x256xf32, #tpu.memory_space<vmem>>) attributes {dimension_semantics = [#tpu.dimension_semantics<parallel>], iteration_bounds = array<i64: 2>, scalar_prefetch = 0 : i64, scratch_operands = 0 : i64, tpu.core_type = #tpu.core_type<tc>, window_params = [{transform_indices = @transform_0, window_bounds = array<i64: 1, 4, 290>}, {pipeline_mode = #tpu.pipeline_mode<synchronous>, transform_indices = @transform_1, window_bounds = array<i64: 9, 256>}, {pipeline_mode = #tpu.pipeline_mode<synchronous>, transform_indices = @transform_2, window_bounds = array<i64: 8, 4>}, {pipeline_mode = #tpu.pipeline_mode<synchronous>, transform_indices = @transform_3, window_bounds = array<i64: 8, 1>}, {pipeline_mode = #tpu.pipeline_mode<synchronous>, transform_indices = @transform_4, window_bounds = array<i64: 8, 9>}, {pipeline_mode = #tpu.pipeline_mode<synchronous>, transform_indices = @transform_5, window_bounds = array<i64: 8, 1>}, {pipeline_mode = #tpu.pipeline_mode<synchronous>, transform_indices = @transform_6, window_bounds = array<i64: 8, 2>}, {pipeline_mode = #tpu.pipeline_mode<synchronous>, transform_indices = @transform_7, window_bounds = array<i64: 1, 2>}, {pipeline_mode = #tpu.pipeline_mode<synchronous>, transform_indices = @transform_8, window_bounds = array<i64: 8, 2>}, {pipeline_mode = #tpu.pipeline_mode<synchronous>, transform_indices = @transform_9, window_bounds = array<i64: 8, 1>}, {pipeline_mode = #tpu.pipeline_mode<synchronous>, transform_indices = @transform_10, window_bounds = array<i64: 4, 8>}, {pipeline_mode = #tpu.pipeline_mode<synchronous>, transform_indices = @transform_11, window_bounds = array<i64: 4, 1>}, {transform_indices = @transform_12, window_bounds = array<i64: 1, 4, 256>}]} {
    %c0 = arith.constant 0 : index
    %c0_0 = arith.constant 0 : index
    %c0_1 = arith.constant 0 : index
    %0 = vector.load %arg1[%c0, %c0_0, %c0_1] : memref<1x4x290xf32, #tpu.memory_space<vmem>>, vector<1x4x290xf32>
    %1 = vector.shape_cast %0 : vector<1x4x290xf32> to vector<4x290xf32>
    %c0_2 = arith.constant 0 : index
    %c0_3 = arith.constant 0 : index
    %2 = vector.load %arg3[%c0_2, %c0_3] : memref<8x4xf32, #tpu.memory_space<vmem>>, vector<8x4xf32>
    %cst = arith.constant 0.000000e+00 : f32
    %3 = vector.broadcast %cst : f32 to vector<8x290xf32>
    %4 = vector.extract_strided_slice %2 {offsets = [0, 0], sizes = [8, 1], strides = [1, 1]} : vector<8x4xf32> to vector<8x1xf32>
    %5 = vector.extract_strided_slice %1 {offsets = [0, 0], sizes = [1, 290], strides = [1, 1]} : vector<4x290xf32> to vector<1x290xf32>
    %6 = vector.broadcast %4 : vector<8x1xf32> to vector<8x290xf32>
    %7 = vector.broadcast %5 : vector<1x290xf32> to vector<8x290xf32>
    %8 = arith.mulf %6, %7 : vector<8x290xf32>
    %9 = arith.addf %3, %8 : vector<8x290xf32>
    %10 = vector.extract_strided_slice %2 {offsets = [0, 1], sizes = [8, 1], strides = [1, 1]} : vector<8x4xf32> to vector<8x1xf32>
    %11 = vector.extract_strided_slice %1 {offsets = [1, 0], sizes = [1, 290], strides = [1, 1]} : vector<4x290xf32> to vector<1x290xf32>
    %12 = vector.broadcast %10 : vector<8x1xf32> to vector<8x290xf32>
    %13 = vector.broadcast %11 : vector<1x290xf32> to vector<8x290xf32>
    %14 = arith.mulf %12, %13 : vector<8x290xf32>
    %15 = arith.addf %9, %14 : vector<8x290xf32>
    %16 = vector.extract_strided_slice %2 {offsets = [0, 2], sizes = [8, 1], strides = [1, 1]} : vector<8x4xf32> to vector<8x1xf32>
    %17 = vector.extract_strided_slice %1 {offsets = [2, 0], sizes = [1, 290], strides = [1, 1]} : vector<4x290xf32> to vector<1x290xf32>
    %18 = vector.broadcast %16 : vector<8x1xf32> to vector<8x290xf32>
    %19 = vector.broadcast %17 : vector<1x290xf32> to vector<8x290xf32>
    %20 = arith.mulf %18, %19 : vector<8x290xf32>
    %21 = arith.addf %15, %20 : vector<8x290xf32>
    %22 = vector.extract_strided_slice %2 {offsets = [0, 3], sizes = [8, 1], strides = [1, 1]} : vector<8x4xf32> to vector<8x1xf32>
    %23 = vector.extract_strided_slice %1 {offsets = [3, 0], sizes = [1, 290], strides = [1, 1]} : vector<4x290xf32> to vector<1x290xf32>
    %24 = vector.broadcast %22 : vector<8x1xf32> to vector<8x290xf32>
    %25 = vector.broadcast %23 : vector<1x290xf32> to vector<8x290xf32>
    %26 = arith.mulf %24, %25 : vector<8x290xf32>
    %27 = arith.addf %21, %26 : vector<8x290xf32>
    %c0_4 = arith.constant 0 : index
    %c0_5 = arith.constant 0 : index
    %28 = vector.load %arg4[%c0_4, %c0_5] : memref<8x1xf32, #tpu.memory_space<vmem>>, vector<8x1xf32>
    %29 = vector.broadcast %28 : vector<8x1xf32> to vector<8x290xf32>
    %30 = arith.addf %27, %29 : vector<8x290xf32>
    %cst_6 = arith.constant 3.000000e+00 : f32
    %31 = vector.broadcast %cst_6 : f32 to vector<8x290xf32>
    %32 = arith.addf %30, %31 : vector<8x290xf32>
    %cst_7 = arith.constant 0.000000e+00 : f32
    %cst_8 = arith.constant 6.000000e+00 : f32
    %33 = vector.broadcast %cst_7 : f32 to vector<8x290xf32>
    %34 = arith.maximumf %33, %32 : vector<8x290xf32>
    %35 = vector.broadcast %cst_8 : f32 to vector<8x290xf32>
    %36 = arith.minimumf %35, %34 : vector<8x290xf32>
    %37 = arith.mulf %30, %36 : vector<8x290xf32>
    %cst_9 = arith.constant 0.166666672 : f32
    %38 = vector.broadcast %cst_9 : f32 to vector<8x290xf32>
    %39 = arith.mulf %37, %38 : vector<8x290xf32>
    %cst_10 = arith.constant 0.000000e+00 : f32
    %40 = vector.broadcast %cst_10 : f32 to vector<8x256xf32>
    %41 = vector.extract_strided_slice %39 {offsets = [0, 0], sizes = [8, 256], strides = [1, 1]} : vector<8x290xf32> to vector<8x256xf32>
    %c0_11 = arith.constant 0 : index
    %c0_12 = arith.constant 0 : index
    %42 = vector.load %arg5[%c0_11, %c0_12] : memref<8x9xf32, #tpu.memory_space<vmem>>, vector<8x1xf32>
    %c0_13 = arith.constant 0 : index
    %c0_14 = arith.constant 0 : index
    %43 = vector.load %arg2[%c0_13, %c0_14] : memref<9x256xf32, #tpu.memory_space<vmem>>, vector<1x256xf32>
    %44 = vector.broadcast %43 : vector<1x256xf32> to vector<8x256xf32>
    %45 = arith.mulf %41, %44 : vector<8x256xf32>
    %46 = vector.broadcast %42 : vector<8x1xf32> to vector<8x256xf32>
    %47 = arith.mulf %45, %46 : vector<8x256xf32>
    %48 = arith.addf %40, %47 : vector<8x256xf32>
    %49 = vector.extract_strided_slice %39 {offsets = [0, 1], sizes = [8, 256], strides = [1, 1]} : vector<8x290xf32> to vector<8x256xf32>
    %c0_15 = arith.constant 0 : index
    %c1 = arith.constant 1 : index
    %50 = vector.load %arg5[%c0_15, %c1] : memref<8x9xf32, #tpu.memory_space<vmem>>, vector<8x1xf32>
    %c1_16 = arith.constant 1 : index
    %c0_17 = arith.constant 0 : index
    %51 = vector.load %arg2[%c1_16, %c0_17] : memref<9x256xf32, #tpu.memory_space<vmem>>, vector<1x256xf32>
    %52 = vector.broadcast %51 : vector<1x256xf32> to vector<8x256xf32>
    %53 = arith.mulf %49, %52 : vector<8x256xf32>
    %54 = vector.broadcast %50 : vector<8x1xf32> to vector<8x256xf32>
    %55 = arith.mulf %53, %54 : vector<8x256xf32>
    %56 = arith.addf %48, %55 : vector<8x256xf32>
    %57 = vector.extract_strided_slice %39 {offsets = [0, 2], sizes = [8, 256], strides = [1, 1]} : vector<8x290xf32> to vector<8x256xf32>
    %c0_18 = arith.constant 0 : index
    %c2 = arith.constant 2 : index
    %58 = vector.load %arg5[%c0_18, %c2] : memref<8x9xf32, #tpu.memory_space<vmem>>, vector<8x1xf32>
    %c2_19 = arith.constant 2 : index
    %c0_20 = arith.constant 0 : index
    %59 = vector.load %arg2[%c2_19, %c0_20] : memref<9x256xf32, #tpu.memory_space<vmem>>, vector<1x256xf32>
    %60 = vector.broadcast %59 : vector<1x256xf32> to vector<8x256xf32>
    %61 = arith.mulf %57, %60 : vector<8x256xf32>
    %62 = vector.broadcast %58 : vector<8x1xf32> to vector<8x256xf32>
    %63 = arith.mulf %61, %62 : vector<8x256xf32>
    %64 = arith.addf %56, %63 : vector<8x256xf32>
    %65 = vector.extract_strided_slice %39 {offsets = [0, 16], sizes = [8, 256], strides = [1, 1]} : vector<8x290xf32> to vector<8x256xf32>
    %c0_21 = arith.constant 0 : index
    %c3 = arith.constant 3 : index
    %66 = vector.load %arg5[%c0_21, %c3] : memref<8x9xf32, #tpu.memory_space<vmem>>, vector<8x1xf32>
    %c3_22 = arith.constant 3 : index
    %c0_23 = arith.constant 0 : index
    %67 = vector.load %arg2[%c3_22, %c0_23] : memref<9x256xf32, #tpu.memory_space<vmem>>, vector<1x256xf32>
    %68 = vector.broadcast %67 : vector<1x256xf32> to vector<8x256xf32>
    %69 = arith.mulf %65, %68 : vector<8x256xf32>
    %70 = vector.broadcast %66 : vector<8x1xf32> to vector<8x256xf32>
    %71 = arith.mulf %69, %70 : vector<8x256xf32>
    %72 = arith.addf %64, %71 : vector<8x256xf32>
    %73 = vector.extract_strided_slice %39 {offsets = [0, 17], sizes = [8, 256], strides = [1, 1]} : vector<8x290xf32> to vector<8x256xf32>
    %c0_24 = arith.constant 0 : index
    %c4 = arith.constant 4 : index
    %74 = vector.load %arg5[%c0_24, %c4] : memref<8x9xf32, #tpu.memory_space<vmem>>, vector<8x1xf32>
    %75 = vector.broadcast %74 : vector<8x1xf32> to vector<8x256xf32>
    %76 = arith.mulf %73, %75 : vector<8x256xf32>
    %77 = arith.addf %72, %76 : vector<8x256xf32>
    %78 = vector.extract_strided_slice %39 {offsets = [0, 18], sizes = [8, 256], strides = [1, 1]} : vector<8x290xf32> to vector<8x256xf32>
    %c0_25 = arith.constant 0 : index
    %c5 = arith.constant 5 : index
    %79 = vector.load %arg5[%c0_25, %c5] : memref<8x9xf32, #tpu.memory_space<vmem>>, vector<8x1xf32>
    %c5_26 = arith.constant 5 : index
    %c0_27 = arith.constant 0 : index
    %80 = vector.load %arg2[%c5_26, %c0_27] : memref<9x256xf32, #tpu.memory_space<vmem>>, vector<1x256xf32>
    %81 = vector.broadcast %80 : vector<1x256xf32> to vector<8x256xf32>
    %82 = arith.mulf %78, %81 : vector<8x256xf32>
    %83 = vector.broadcast %79 : vector<8x1xf32> to vector<8x256xf32>
    %84 = arith.mulf %82, %83 : vector<8x256xf32>
    %85 = arith.addf %77, %84 : vector<8x256xf32>
    %86 = vector.extract_strided_slice %39 {offsets = [0, 32], sizes = [8, 256], strides = [1, 1]} : vector<8x290xf32> to vector<8x256xf32>
    %c0_28 = arith.constant 0 : index
    %c6 = arith.constant 6 : index
    %87 = vector.load %arg5[%c0_28, %c6] : memref<8x9xf32, #tpu.memory_space<vmem>>, vector<8x1xf32>
    %c6_29 = arith.constant 6 : index
    %c0_30 = arith.constant 0 : index
    %88 = vector.load %arg2[%c6_29, %c0_30] : memref<9x256xf32, #tpu.memory_space<vmem>>, vector<1x256xf32>
    %89 = vector.broadcast %88 : vector<1x256xf32> to vector<8x256xf32>
    %90 = arith.mulf %86, %89 : vector<8x256xf32>
    %91 = vector.broadcast %87 : vector<8x1xf32> to vector<8x256xf32>
    %92 = arith.mulf %90, %91 : vector<8x256xf32>
    %93 = arith.addf %85, %92 : vector<8x256xf32>
    %94 = vector.extract_strided_slice %39 {offsets = [0, 33], sizes = [8, 256], strides = [1, 1]} : vector<8x290xf32> to vector<8x256xf32>
    %c0_31 = arith.constant 0 : index
    %c7 = arith.constant 7 : index
    %95 = vector.load %arg5[%c0_31, %c7] : memref<8x9xf32, #tpu.memory_space<vmem>>, vector<8x1xf32>
    %c7_32 = arith.constant 7 : index
    %c0_33 = arith.constant 0 : index
    %96 = vector.load %arg2[%c7_32, %c0_33] : memref<9x256xf32, #tpu.memory_space<vmem>>, vector<1x256xf32>
    %97 = vector.broadcast %96 : vector<1x256xf32> to vector<8x256xf32>
    %98 = arith.mulf %94, %97 : vector<8x256xf32>
    %99 = vector.broadcast %95 : vector<8x1xf32> to vector<8x256xf32>
    %100 = arith.mulf %98, %99 : vector<8x256xf32>
    %101 = arith.addf %93, %100 : vector<8x256xf32>
    %102 = vector.extract_strided_slice %39 {offsets = [0, 34], sizes = [8, 256], strides = [1, 1]} : vector<8x290xf32> to vector<8x256xf32>
    %c0_34 = arith.constant 0 : index
    %c8 = arith.constant 8 : index
    %103 = vector.load %arg5[%c0_34, %c8] : memref<8x9xf32, #tpu.memory_space<vmem>>, vector<8x1xf32>
    %c8_35 = arith.constant 8 : index
    %c0_36 = arith.constant 0 : index
    %104 = vector.load %arg2[%c8_35, %c0_36] : memref<9x256xf32, #tpu.memory_space<vmem>>, vector<1x256xf32>
    %105 = vector.broadcast %104 : vector<1x256xf32> to vector<8x256xf32>
    %106 = arith.mulf %102, %105 : vector<8x256xf32>
    %107 = vector.broadcast %103 : vector<8x1xf32> to vector<8x256xf32>
    %108 = arith.mulf %106, %107 : vector<8x256xf32>
    %109 = arith.addf %101, %108 : vector<8x256xf32>
    %c0_37 = arith.constant 0 : index
    %c0_38 = arith.constant 0 : index
    %110 = vector.load %arg6[%c0_37, %c0_38] : memref<8x1xf32, #tpu.memory_space<vmem>>, vector<8x1xf32>
    %111 = vector.broadcast %110 : vector<8x1xf32> to vector<8x256xf32>
    %112 = arith.addf %109, %111 : vector<8x256xf32>
    %cst_39 = arith.constant 3.000000e+00 : f32
    %113 = vector.broadcast %cst_39 : f32 to vector<8x256xf32>
    %114 = arith.addf %112, %113 : vector<8x256xf32>
    %cst_40 = arith.constant 0.000000e+00 : f32
    %cst_41 = arith.constant 6.000000e+00 : f32
    %115 = vector.broadcast %cst_40 : f32 to vector<8x256xf32>
    %116 = arith.maximumf %115, %114 : vector<8x256xf32>
    %117 = vector.broadcast %cst_41 : f32 to vector<8x256xf32>
    %118 = arith.minimumf %117, %116 : vector<8x256xf32>
    %119 = arith.mulf %112, %118 : vector<8x256xf32>
    %cst_42 = arith.constant 0.166666672 : f32
    %120 = vector.broadcast %cst_42 : f32 to vector<8x256xf32>
    %121 = arith.mulf %119, %120 : vector<8x256xf32>
    %cst_43 = arith.constant dense<0.000000e+00> : vector<8xf32>
    %122 = vector.multi_reduction <add>, %121, %cst_43 [1] : vector<8x256xf32> to vector<8xf32>
    %123 = vector.shape_cast %122 : vector<8xf32> to vector<8x1xf32>
    %cst_44 = arith.constant 3.906250e-03 : f32
    %124 = vector.broadcast %cst_44 : f32 to vector<8x1xf32>
    %125 = arith.mulf %123, %124 : vector<8x1xf32>
    %c0_45 = arith.constant 0 : index
    %c0_46 = arith.constant 0 : index
    %126 = vector.load %arg7[%c0_45, %c0_46] : memref<8x2xf32, #tpu.memory_space<vmem>>, vector<8x2xf32>
    %127 = vector.broadcast %125 : vector<8x1xf32> to vector<8x2xf32>
    %128 = arith.mulf %126, %127 : vector<8x2xf32>
    %cst_47 = arith.constant dense<0.000000e+00> : vector<2xf32>
    %129 = vector.multi_reduction <add>, %128, %cst_47 [0] : vector<8x2xf32> to vector<2xf32>
    %130 = vector.shape_cast %129 : vector<2xf32> to vector<1x2xf32>
    %c0_48 = arith.constant 0 : index
    %c0_49 = arith.constant 0 : index
    %131 = vector.load %arg8[%c0_48, %c0_49] : memref<1x2xf32, #tpu.memory_space<vmem>>, vector<1x2xf32>
    %132 = arith.addf %130, %131 : vector<1x2xf32>
    %cst_50 = arith.constant 0.000000e+00 : f32
    %133 = vector.broadcast %cst_50 : f32 to vector<1x2xf32>
    %134 = arith.maximumf %132, %133 : vector<1x2xf32>
    %c0_51 = arith.constant 0 : index
    %c0_52 = arith.constant 0 : index
    %135 = vector.load %arg9[%c0_51, %c0_52] : memref<8x2xf32, #tpu.memory_space<vmem>>, vector<8x2xf32>
    %136 = vector.broadcast %134 : vector<1x2xf32> to vector<8x2xf32>
    %137 = arith.mulf %135, %136 : vector<8x2xf32>
    %cst_53 = arith.constant dense<0.000000e+00> : vector<8xf32>
    %138 = vector.multi_reduction <add>, %137, %cst_53 [1] : vector<8x2xf32> to vector<8xf32>
    %139 = vector.shape_cast %138 : vector<8xf32> to vector<8x1xf32>
    %c0_54 = arith.constant 0 : index
    %c0_55 = arith.constant 0 : index
    %140 = vector.load %arg10[%c0_54, %c0_55] : memref<8x1xf32, #tpu.memory_space<vmem>>, vector<8x1xf32>
    %141 = arith.addf %139, %140 : vector<8x1xf32>
    %cst_56 = arith.constant 3.000000e+00 : f32
    %142 = vector.broadcast %cst_56 : f32 to vector<8x1xf32>
    %143 = arith.addf %141, %142 : vector<8x1xf32>
    %cst_57 = arith.constant 0.000000e+00 : f32
    %cst_58 = arith.constant 6.000000e+00 : f32
    %144 = vector.broadcast %cst_57 : f32 to vector<8x1xf32>
    %145 = arith.maximumf %144, %143 : vector<8x1xf32>
    %146 = vector.broadcast %cst_58 : f32 to vector<8x1xf32>
    %147 = arith.minimumf %146, %145 : vector<8x1xf32>
    %cst_59 = arith.constant 0.166666672 : f32
    %148 = vector.broadcast %cst_59 : f32 to vector<8x1xf32>
    %149 = arith.mulf %147, %148 : vector<8x1xf32>
    %150 = vector.broadcast %149 : vector<8x1xf32> to vector<8x256xf32>
    %151 = arith.mulf %121, %150 : vector<8x256xf32>
    %c0_60 = arith.constant 0 : index
    %c0_61 = arith.constant 0 : index
    %152 = vector.load %arg11[%c0_60, %c0_61] : memref<4x8xf32, #tpu.memory_space<vmem>>, vector<4x8xf32>
    %cst_62 = arith.constant 0.000000e+00 : f32
    %153 = vector.broadcast %cst_62 : f32 to vector<4x256xf32>
    %154 = vector.extract_strided_slice %152 {offsets = [0, 0], sizes = [4, 1], strides = [1, 1]} : vector<4x8xf32> to vector<4x1xf32>
    %155 = vector.extract_strided_slice %151 {offsets = [0, 0], sizes = [1, 256], strides = [1, 1]} : vector<8x256xf32> to vector<1x256xf32>
    %156 = vector.broadcast %154 : vector<4x1xf32> to vector<4x256xf32>
    %157 = vector.broadcast %155 : vector<1x256xf32> to vector<4x256xf32>
    %158 = arith.mulf %156, %157 : vector<4x256xf32>
    %159 = arith.addf %153, %158 : vector<4x256xf32>
    %160 = vector.extract_strided_slice %152 {offsets = [0, 1], sizes = [4, 1], strides = [1, 1]} : vector<4x8xf32> to vector<4x1xf32>
    %161 = vector.extract_strided_slice %151 {offsets = [1, 0], sizes = [1, 256], strides = [1, 1]} : vector<8x256xf32> to vector<1x256xf32>
    %162 = vector.broadcast %160 : vector<4x1xf32> to vector<4x256xf32>
    %163 = vector.broadcast %161 : vector<1x256xf32> to vector<4x256xf32>
    %164 = arith.mulf %162, %163 : vector<4x256xf32>
    %165 = arith.addf %159, %164 : vector<4x256xf32>
    %166 = vector.extract_strided_slice %152 {offsets = [0, 2], sizes = [4, 1], strides = [1, 1]} : vector<4x8xf32> to vector<4x1xf32>
    %167 = vector.extract_strided_slice %151 {offsets = [2, 0], sizes = [1, 256], strides = [1, 1]} : vector<8x256xf32> to vector<1x256xf32>
    %168 = vector.broadcast %166 : vector<4x1xf32> to vector<4x256xf32>
    %169 = vector.broadcast %167 : vector<1x256xf32> to vector<4x256xf32>
    %170 = arith.mulf %168, %169 : vector<4x256xf32>
    %171 = arith.addf %165, %170 : vector<4x256xf32>
    %172 = vector.extract_strided_slice %152 {offsets = [0, 3], sizes = [4, 1], strides = [1, 1]} : vector<4x8xf32> to vector<4x1xf32>
    %173 = vector.extract_strided_slice %151 {offsets = [3, 0], sizes = [1, 256], strides = [1, 1]} : vector<8x256xf32> to vector<1x256xf32>
    %174 = vector.broadcast %172 : vector<4x1xf32> to vector<4x256xf32>
    %175 = vector.broadcast %173 : vector<1x256xf32> to vector<4x256xf32>
    %176 = arith.mulf %174, %175 : vector<4x256xf32>
    %177 = arith.addf %171, %176 : vector<4x256xf32>
    %178 = vector.extract_strided_slice %152 {offsets = [0, 4], sizes = [4, 1], strides = [1, 1]} : vector<4x8xf32> to vector<4x1xf32>
    %179 = vector.extract_strided_slice %151 {offsets = [4, 0], sizes = [1, 256], strides = [1, 1]} : vector<8x256xf32> to vector<1x256xf32>
    %180 = vector.broadcast %178 : vector<4x1xf32> to vector<4x256xf32>
    %181 = vector.broadcast %179 : vector<1x256xf32> to vector<4x256xf32>
    %182 = arith.mulf %180, %181 : vector<4x256xf32>
    %183 = arith.addf %177, %182 : vector<4x256xf32>
    %184 = vector.extract_strided_slice %152 {offsets = [0, 5], sizes = [4, 1], strides = [1, 1]} : vector<4x8xf32> to vector<4x1xf32>
    %185 = vector.extract_strided_slice %151 {offsets = [5, 0], sizes = [1, 256], strides = [1, 1]} : vector<8x256xf32> to vector<1x256xf32>
    %186 = vector.broadcast %184 : vector<4x1xf32> to vector<4x256xf32>
    %187 = vector.broadcast %185 : vector<1x256xf32> to vector<4x256xf32>
    %188 = arith.mulf %186, %187 : vector<4x256xf32>
    %189 = arith.addf %183, %188 : vector<4x256xf32>
    %190 = vector.extract_strided_slice %152 {offsets = [0, 6], sizes = [4, 1], strides = [1, 1]} : vector<4x8xf32> to vector<4x1xf32>
    %191 = vector.extract_strided_slice %151 {offsets = [6, 0], sizes = [1, 256], strides = [1, 1]} : vector<8x256xf32> to vector<1x256xf32>
    %192 = vector.broadcast %190 : vector<4x1xf32> to vector<4x256xf32>
    %193 = vector.broadcast %191 : vector<1x256xf32> to vector<4x256xf32>
    %194 = arith.mulf %192, %193 : vector<4x256xf32>
    %195 = arith.addf %189, %194 : vector<4x256xf32>
    %196 = vector.extract_strided_slice %152 {offsets = [0, 7], sizes = [4, 1], strides = [1, 1]} : vector<4x8xf32> to vector<4x1xf32>
    %197 = vector.extract_strided_slice %151 {offsets = [7, 0], sizes = [1, 256], strides = [1, 1]} : vector<8x256xf32> to vector<1x256xf32>
    %198 = vector.broadcast %196 : vector<4x1xf32> to vector<4x256xf32>
    %199 = vector.broadcast %197 : vector<1x256xf32> to vector<4x256xf32>
    %200 = arith.mulf %198, %199 : vector<4x256xf32>
    %201 = arith.addf %195, %200 : vector<4x256xf32>
    %c0_63 = arith.constant 0 : index
    %c0_64 = arith.constant 0 : index
    %202 = vector.load %arg12[%c0_63, %c0_64] : memref<4x1xf32, #tpu.memory_space<vmem>>, vector<4x1xf32>
    %203 = vector.broadcast %202 : vector<4x1xf32> to vector<4x256xf32>
    %204 = arith.addf %201, %203 : vector<4x256xf32>
    %205 = vector.extract_strided_slice %1 {offsets = [0, 17], sizes = [4, 256], strides = [1, 1]} : vector<4x290xf32> to vector<4x256xf32>
    %206 = arith.addf %204, %205 : vector<4x256xf32>
    %c0_65 = arith.constant 0 : index
    %c0_66 = arith.constant 0 : index
    %c0_67 = arith.constant 0 : index
    %207 = vector.load %arg13[%c0_65, %c0_66, %c0_67] : memref<1x4x256xf32, #tpu.memory_space<vmem>>, vector<1x4x256xf32>
    %208 = vector.shape_cast %207 : vector<1x4x256xf32> to vector<4x256xf32>
    %209 = vector.shape_cast %206 : vector<4x256xf32> to vector<1x4x256xf32>
    tpu.vector_store %arg13[%c0_65, %c0_66, %c0_67], %209 {strides = array<i32>} : memref<1x4x256xf32, #tpu.memory_space<vmem>>, vector<1x4x256xf32>,
    return
  }
  func.func @transform_0(%arg0: i32) -> (i32, i32, i32) {
    %c0_i32 = arith.constant 0 : i32
    %c0_i32_0 = arith.constant 0 : i32
    %c0_i32_1 = arith.constant 0 : i32
    return %arg0, %c0_i32, %c0_i32_0 : i32, i32, i32
  }
  func.func @transform_1(%arg0: i32) -> (i32, i32) {
    %c0_i32 = arith.constant 0 : i32
    %c0_i32_0 = arith.constant 0 : i32
    %c0_i32_1 = arith.constant 0 : i32
    return %c0_i32, %c0_i32_0 : i32, i32
  }
  func.func @transform_2(%arg0: i32) -> (i32, i32) {
    %c0_i32 = arith.constant 0 : i32
    %c0_i32_0 = arith.constant 0 : i32
    %c0_i32_1 = arith.constant 0 : i32
    return %c0_i32, %c0_i32_0 : i32, i32
  }
  func.func @transform_3(%arg0: i32) -> (i32, i32) {
    %c0_i32 = arith.constant 0 : i32
    %c0_i32_0 = arith.constant 0 : i32
    %c0_i32_1 = arith.constant 0 : i32
    return %c0_i32, %c0_i32_0 : i32, i32
  }
  func.func @transform_4(%arg0: i32) -> (i32, i32) {
    %c0_i32 = arith.constant 0 : i32
    %c0_i32_0 = arith.constant 0 : i32
    %c0_i32_1 = arith.constant 0 : i32
    return %c0_i32, %c0_i32_0 : i32, i32
  }
  func.func @transform_5(%arg0: i32) -> (i32, i32) {
    %c0_i32 = arith.constant 0 : i32
    %c0_i32_0 = arith.constant 0 : i32
    %c0_i32_1 = arith.constant 0 : i32
    return %c0_i32, %c0_i32_0 : i32, i32
  }
  func.func @transform_6(%arg0: i32) -> (i32, i32) {
    %c0_i32 = arith.constant 0 : i32
    %c0_i32_0 = arith.constant 0 : i32
    %c0_i32_1 = arith.constant 0 : i32
    return %c0_i32, %c0_i32_0 : i32, i32
  }
  func.func @transform_7(%arg0: i32) -> (i32, i32) {
    %c0_i32 = arith.constant 0 : i32
    %c0_i32_0 = arith.constant 0 : i32
    %c0_i32_1 = arith.constant 0 : i32
    return %c0_i32, %c0_i32_0 : i32, i32
  }
  func.func @transform_8(%arg0: i32) -> (i32, i32) {
    %c0_i32 = arith.constant 0 : i32
    %c0_i32_0 = arith.constant 0 : i32
    %c0_i32_1 = arith.constant 0 : i32
    return %c0_i32, %c0_i32_0 : i32, i32
  }
  func.func @transform_9(%arg0: i32) -> (i32, i32) {
    %c0_i32 = arith.constant 0 : i32
    %c0_i32_0 = arith.constant 0 : i32
    %c0_i32_1 = arith.constant 0 : i32
    return %c0_i32, %c0_i32_0 : i32, i32
  }
  func.func @transform_10(%arg0: i32) -> (i32, i32) {
    %c0_i32 = arith.constant 0 : i32
    %c0_i32_0 = arith.constant 0 : i32
    %c0_i32_1 = arith.constant 0 : i32
    return %c0_i32, %c0_i32_0 : i32, i32
  }
  func.func @transform_11(%arg0: i32) -> (i32, i32) {
    %c0_i32 = arith.constant 0 : i32
    %c0_i32_0 = arith.constant 0 : i32
    %c0_i32_1 = arith.constant 0 : i32
    return %c0_i32, %c0_i32_0 : i32, i32
  }
  func.func @transform_12(%arg0: i32) -> (i32, i32, i32) {
    %c0_i32 = arith.constant 0 : i32
    %c0_i32_0 = arith.constant 0 : i32
    %c0_i32_1 = arith.constant 0 : i32
    return %arg0, %c0_i32, %c0_i32_0 : i32, i32, i32
  }
}

</mosaic_0001>

<bundles_post_ra>
// kernel: tpu_custom_call.1
= control target key start
LH: loop header
LB: loop body
LE: loop exit
PB: predicated region body
PF: predicated region fallthrough
CT: control target
= control target key end

     0   :  { %s1853_s0 = inlined_call_operand.vmem [shape: f32[2,4,290], index: 0, kind: input, shape index: {}]   ;;  %s1854_s1 = inlined_call_operand.vmem [shape: f32[9,256], index: 1, kind: input, shape index: {}]   ;;  %s1855_s2 = inlined_call_operand.vmem [shape: f32[8,4], index: 2, kind: input, shape index: {}]   ;;  %s1856_s3 = inlined_call_operand.vmem [shape: f32[8,1], index: 3, kind: input, shape index: {}]   ;;  %s1857_s4 = inlined_call_operand.vmem [shape: f32[8,9], index: 4, kind: input, shape index: {}]   ;;  %s1858_s5 = inlined_call_operand.vmem [shape: f32[8,1], index: 5, kind: input, shape index: {}]   ;;  %s1859_s6 = inlined_call_operand.vmem [shape: f32[8,2], index: 6, kind: input, shape index: {}]   ;;  %s1860_s7 = inlined_call_operand.vmem [shape: f32[1,2], index: 7, kind: input, shape index: {}]   ;;  %s1861_s8 = inlined_call_operand.vmem [shape: f32[8,2], index: 8, kind: input, shape index: {}]   ;;  %s1862_s9 = inlined_call_operand.vmem [shape: f32[8,1], index: 9, kind: input, shape index: {}]   ;;  %s1863_s10 = inlined_call_operand.vmem [shape: f32[4,8], index: 10, kind: input, shape index: {}]   ;;  %s1864_s11 = inlined_call_operand.vmem [shape: f32[4,1], index: 11, kind: input, shape index: {}]   ;;  %s1865_s12 = inlined_call_operand.hbm [shape: f32[2,4,256], index: 12, kind: output, shape index: {}]  }
   0x1   :  { %1866 = sst [smem:[#allocation5_spill]] %s1853_s0 }
   0x2   :  { %1867 = sst [smem:[#allocation6_spill]] %s1854_s1 }
   0x3   :  { %17 = vsyncpa [#allocation3], 0 }
   0x4   :  { %19 = vsyncpa [#allocation3 + $0x1], 0  ;;  %s1505_s21 = smov 0   ;;  %s1507_s22 = smov 0  }
   0x5   :  { %s1509_s23 = smov 0   ;;  %s1511_s24 = smov 0  }
   0x6 LB: > { %s1526_s25 = sadd.s32 4294967295, %s1413_s24   ;;  %s1245_s26 = sadd.s32 4294967294, %s1413_s24   ;;  %s1413_s24 = sphi %s1511_s24, %s1875_s24   ;;  %s1409_s23 = sphi %s1509_s23, %s1874_s23   ;;  %s1405_s22 = sphi %s1507_s22, %s1873_s22   ;;  %s1401_s21 = sphi %s1505_s21, %s1872_s21  }
   0x7   : > { %s1530_s27 = sadd.s32 1, %s1413_s24   ;;  %s289_s28 = sadd.s32 1, %s1409_s23 }
   0x8   : > { %s286_s29 = ssub.s32 %s1413_s24, %s1530_s27  ;;  %p299_p0 = scmp.ne.s32.totalorder %s1409_s23, %s1405_s22 }
   0x9   : > { %p287_p1 = scmp.eq.s32.totalorder %s286_s29, 0  ;;  %p300_p2 = scmp.eq.s32.totalorder %s1526_s25, 1 }
   0xa   : > { %p305_p3 = scmp.ne.s32.totalorder %s1405_s22, %s1401_s21  ;;  %p306_p4 = scmp.eq.s32.totalorder %s1245_s26, 1 }
   0xb   : > { %s1541_s30 = scalar_select %p287_p1, %s1409_s23, %s289_s28  }
   0xc   : > { %p1543_p5 = por %p300_p2, %p299_p0  ;;  %p1547_p6 = por %p306_p4, %p305_p3 }
   0xd   : > { %p1248_p7 = scmp.ge.s32.totalorder %s1413_s24, 1  ;;  %p365_p8 = scmp.lt.s32.totalorder %s1413_s24, 3 }
   0xf   : > { %p366_p9 = pnand %p1248_p7, %p365_p8 }
  0x10   : > { %v414_v0 = vld [vmem:[%s1855_s2] sm:$0xff] (!%p366_p9)  ;;  %v1415_v1 = vmov (!%p366_p9), 2   ;;  %v1416_v2 = vmov (!%p366_p9), 0   ;;  %v422_v3 = vlaneseq (!%p366_p9)  ;;  %v1417_v5 = vmov (!%p366_p9), 3   ;;  %s1870_s1 = sld [smem:[#allocation6_spill]] (!%p366_p9)  ;;  %s1419_s29 = smov (!%p366_p9), 1  }
  0x11   : > { %369 = sbr.rel (%p366_p9) target bundleno = 841 (0x349), region = 68  ;;  %1330 = vset.pattern.permute.xlu1 (!%p366_p9), %v1415_v1  ;;  %1328 = vset.pattern.permute.xlu0 (!%p366_p9), %v1416_v2  ;;  %v1418_v6 = vmov (!%p366_p9), 1   ;;  %v590_v8 = vld [vmem:[%s1857_s4] sm:$0xff] (!%p366_p9)  ;;  %v1420_v16 = vmov (!%p366_p9), 6   ;;  %v1421_v17 = vmov (!%p366_p9), 4   ;;  %s1422_s17 = smov (!%p366_p9), 2  }
  0x12   : > { %493 = vperm.xlu1 (!%p366_p9), %1330, %v414_v0   ;;  %417 = vperm.xlu0 (!%p366_p9), %1328, %v414_v0   ;;  %v1558_v4 = vshrl.u32 (!%p366_p9), %v422_v3, 7  ;;  %v566_v10 = vld [vmem:[%s1856_s3] sm:$0xff] (!%p366_p9)  ;;  %v1423_v21 = vmov (!%p366_p9), 5   ;;  %s1424_s15 = smov (!%p366_p9), 16   ;;  %s1425_s16 = smov (!%p366_p9), 18   ;;  %v1426_v27 = vmov (!%p366_p9), 8  }
  0x13   : > { %s1428_s20 = smov (!%p366_p9), 34   ;;  %v1429_v31 = vmov (!%p366_p9), 7   ;;  %v959_v34 = vld [vmem:[%s1858_s5] sm:$0xff] (!%p366_p9)  ;;  %p407_p10 = scmp.lt.s32.totalorder (!%p366_p9), %s1526_s25, 1  ;;  %vm675_vm0 = vcmask (!%p366_p9), 15360   ;;  %vm629_vm1 = vcmask (!%p366_p9), 7168  }
  0x14   : > { %v1563_v7 = vsub.s32 (!%p366_p9), 0, %v1558_v4  ;;  %v1577_v12 = vsub.s32 (!%p366_p9), 1, %v1558_v4  ;;  %s1871_s0 = sld [smem:[#allocation5_spill]] (!%p366_p9)  ;;  %v1627_v38 = vsub.s32 (!%p366_p9), 4, %v1558_v4  ;;  %v1634_v41 = vsub.s32 (!%p366_p9), 2, %v1558_v4  ;;  %s1437_s26 = smov (!%p366_p9), 95  }
  0x15   : > { %v1637_v42 = vsub.s32 (!%p366_p9), 5, %v1558_v4  ;;  %v1640_v43 = vsub.s32 (!%p366_p9), 6, %v1558_v4  ;;  %v1643_v44 = vsub.s32 (!%p366_p9), 3, %v1558_v4  ;;  %v1646_v45 = vsub.s32 (!%p366_p9), 7, %v1558_v4  ;;  %s1438_s28 = smov (!%p366_p9), 94  }
  0x16   : > { %1331 = vset.pattern.permute.xlu1 (!%p366_p9), %v1417_v5  ;;  %1329 = vset.pattern.permute.xlu0 (!%p366_p9), %v1418_v6  ;;  %v1251_v9 = vld [vmem:[%s1870_s1 + $0x1] ss:$8 sm:$0x3] (!%p366_p9)  ;;  %v1252_v14 = vld [vmem:[%s1870_s1 + $0x2] ss:$8 sm:$0x3] (!%p366_p9) }
  0x17   : > { %530 = vperm.xlu1 (!%p366_p9), %1331, %v414_v0   ;;  %456 = vperm.xlu0 (!%p366_p9), %1329, %v414_v0   ;;  %v620_v11 = vrot.slane (!%p366_p9), %v1251_v9, %v1563_v7  ;;  %v624_v13 = vrot.slane (!%p366_p9), %v1251_v9, %v1577_v12  ;;  %v666_v15 = vrot.slane (!%p366_p9), %v1252_v14, %v1563_v7  ;;  %v1253_v19 = vld [vmem:[%s1870_s1 + $0x3] ss:$8 sm:$0x3] (!%p366_p9)  ;;  %v1254_v20 = vld [vmem:[%s1870_s1 + $0x5] ss:$8 sm:$0x3] (!%p366_p9) }
  0x18   : > { %v670_v18 = vrot.slane %v1252_v14, %v1577_v12  ;;  %v712_v22 = vrot.slane %v1253_v19, %v1563_v7  ;;  %v785_v23 = vrot.slane %v1254_v20, %v1577_v12  ;;  %v1255_v24 = vld [vmem:[%s1870_s1 + $0x6] ss:$8 sm:$0x3]  ;;  %v716_v25 = vrot.slane %v1253_v19, %v1577_v12  ;;  %v1257_v28 = vld [vmem:[%s1870_s1 + $0x10] ss:$8 sm:$0x3] }
  0x19   : > { %v827_v26 = vrot.slane %v1255_v24, %v1563_v7  ;;  %v781_v29 = vrot.slane %v1254_v20, %v1563_v7  ;;  %v919_v30 = vrot.slane %v1257_v28, %v1563_v7  ;;  %v831_v32 = vrot.slane %v1255_v24, %v1577_v12  ;;  %v1256_v33 = vld [vmem:[%s1870_s1 + $0x7] ss:$8 sm:$0x3]  ;;  %s408_s18 = scalar_select %p407_p10, %s1526_s25, 1 }
  0x1a   : > { %v873_v35 = vrot.slane %v1256_v33, %v1563_v7  ;;  %v877_v36 = vrot.slane %v1256_v33, %v1577_v12  ;;  %v923_v37 = vrot.slane %v1257_v28, %v1577_v12  ;;  %vm721_vm2 = vcmask 130048  }
  0x1b   : > { %1332 = vset.pattern.permute.xlu1 %v1416_v2  ;;  %638 = vperm.xlu0 %1329, %v590_v8   ;;  %s1264_s19 = smul.u32 12, %s408_s18  ;;  %vm790_vm3 = vcmask 146432   ;;  %s1435_s18 = smov 110   ;;  %vm836_vm4 = vcmask 261120   ;;  %vm882_vm5 = vcmask 269312   ;;  %vm928_vm6 = vcmask 277504  }
  0x1c   : > { %569 = vperm.xlu1 %1332, %v566_v10   ;;  %vm653_vm7 = vcmask 1039360   ;;  %vm699_vm8 = vcmask 1031168   ;;  %vm745_vm9 = vcmask 916480   ;;  %vm768_vm10 = vcmask 908288  }
  0x1d   : > { %vm814_vm11 = vcmask 900096   ;;  %vm860_vm12 = vcmask 785408   ;;  %vm906_vm13 = vcmask 777216   ;;  %vm952_vm14 = vcmask 769024  }
  0x1f   : > { %625 = vrot.lane.b32.xlu0 %v620_v11, %s1419_s29 }
  0x20   : > { %1333 = vset.pattern.permute.xlu1 %v1415_v1  ;;  %1334 = vset.pattern.permute.xlu0 %v1417_v5 }
  0x21   : > { %684 = vperm.xlu1 %1333, %v590_v8  }
  0x23   : > { %730 = vperm.xlu0 %1334, %v590_v8  }
  0x25   : > { %627 = vrot.lane.b32.xlu1 %v624_v13, %s1419_s29  ;;  %s1432_s29 = smov 127  }
  0x26   : > { %1337 = vset.pattern.permute.xlu1 %v1420_v16 }
  0x27   : > { %1335 = vset.pattern.permute.xlu0 %v1421_v17 }
  0x28   : > { %753 = vperm.xlu0 %1335, %v590_v8  }
  0x29   : > { %671 = vrot.lane.b32.xlu1 %v666_v15, %s1422_s17 }
  0x2c   : > { %1336 = vset.pattern.permute.xlu0 %v1423_v21 }
  0x2d   : > { %673 = vrot.lane.b32.xlu1 %v670_v18, %s1422_s17  ;;  %799 = vperm.xlu0 %1336, %v590_v8   ;;  %s1427_s17 = smov 32  }
  0x31   : > { %717 = vrot.lane.b32.xlu1 %v712_v22, %s1424_s15  ;;  %788 = vrot.lane.b32.xlu0 %v785_v23, %s1425_s16 }
  0x32   : > { %1339 = vset.pattern.permute.xlu0 %v1426_v27 }
  0x35   : > { %719 = vrot.lane.b32.xlu1 %v716_v25, %s1424_s15  ;;  %832 = vrot.lane.b32.xlu0 %v827_v26, %s1427_s17  ;;  %s1433_s15 = smov 126  }
  0x39   : > { %845 = vperm.xlu1 %1337, %v590_v8   ;;  %937 = vperm.xlu0 %1339, %v590_v8  }
  0x3d   : > { %786 = vrot.lane.b32.xlu1 %v781_v29, %s1425_s16  ;;  %924 = vrot.lane.b32.xlu0 %v919_v30, %s1428_s20  ;;  %s1430_s16 = smov 33  }
  0x3e   : > { %1338 = vset.pattern.permute.xlu1 %v1429_v31  ;;  %1340 = vset.pattern.permute.xlu0 %v1416_v2 }
  0x41   : > { %891 = vperm.xlu1 %1338, %v590_v8   ;;  %607 = vperm.xlu0 %1340, %v590_v8  }
  0x45   : > { %834 = vrot.lane.b32.xlu1 %v831_v32, %s1427_s17  ;;  %962 = vperm.xlu0 %1340, %v959_v34   ;;  %s411_s17 = scalar_lea.vmem %s1871_s0, %s1264_s19  ;;  %s1436_s19 = smov 96  }
  0x46   : > { %1341 = vset.pattern.permute.xlu1 %v1416_v2  ;;  %v1629_v39 = vld [vmem:[%s411_s17] sm:$0xff]  ;;  %v1631_v40 = vld [vmem:[%s411_s17 + $0x8] sm:$0xf] }
  0x47   : > { %v425_v46 = vrot.slane %v1629_v39, %v1563_v7  ;;  %v429_v47 = vrot.slane %v1629_v39, %v1627_v38  ;;  %v433_v48 = vrot.slane %v1631_v40, %v1563_v7  ;;  %v499_v49 = vrot.slane %v1629_v39, %v1634_v41 }
  0x48   : > { %v462_v50 = vrot.slane %v1629_v39, %v1577_v12  ;;  %v466_v51 = vrot.slane %v1629_v39, %v1637_v42  ;;  %v470_v52 = vrot.slane %v1631_v40, %v1577_v12  ;;  %v503_v53 = vrot.slane %v1629_v39, %v1640_v43 }
  0x49   : > { %878 = vrot.lane.b32.xlu1 %v873_v35, %s1430_s16  ;;  %v507_v54 = vrot.slane %v1631_v40, %v1634_v41  ;;  %v536_v55 = vrot.slane %v1629_v39, %v1643_v44  ;;  %v540_v56 = vrot.slane %v1629_v39, %v1646_v45  ;;  %v544_v59 = vrot.slane %v1631_v40, %v1643_v44 }
  0x4a   : > { %v440_v60 = vrot.slane %v425_v46, %v1563_v7  ;;  %v444_v61 = vrot.slane %v429_v47, %v1563_v7  ;;  %v448_v62 = vrot.slane %v433_v48, %v1563_v7  ;;  %v514_v63 = vrot.slane %v499_v49, %v1634_v41 }
  0x4b   : > { %v477_v0 = vrot.slane %v462_v50, %v1577_v12  ;;  %v481_v3 = vrot.slane %v466_v51, %v1577_v12  ;;  %v485_v4 = vrot.slane %v470_v52, %v1577_v12  ;;  %v518_v8 = vrot.slane %v503_v53, %v1634_v41 }
  0x4c   : > { %v522_v9 = vrot.slane %v507_v54, %v1634_v41  ;;  %v551_v10 = vrot.slane %v536_v55, %v1643_v44  ;;  %v555_v11 = vrot.slane %v540_v56, %v1643_v44  ;;  %v559_v13 = vrot.slane %v544_v59, %v1643_v44 }
  0x4d   : > { %880 = vrot.lane.b32.xlu1 %v877_v36, %s1430_s16  ;;  %s1434_s16 = smov 112  }
  0x51   : > { %926 = vrot.lane.b32.xlu1 %v923_v37, %s1428_s20  ;;  %s1431_s20 = smov 111  }
  0x91   : > { %v418_v57 = vpop.permute.xlu0 %417  ;;  %v494_v58 = vpop.permute.xlu1 %493 }
  0x92   : > { %v449_v14 = vmul.f32 %v440_v60, %v418_v57  ;;  %v450_v15 = vmul.f32 %v444_v61, %v418_v57  ;;  %v451_v18 = vmul.f32 %v448_v62, %v418_v57  ;;  %v523_v22 = vmul.f32 %v514_v63, %v494_v58 }
  0x93   : > { %v524_v26 = vmul.f32 %v518_v8, %v494_v58  ;;  %v525_v27 = vmul.f32 %v522_v9, %v494_v58 }
  0x96   : > { %v457_v19 = vpop.permute.xlu0 %456  ;;  %v531_v20 = vpop.permute.xlu1 %530 }
  0x97   : > { %v486_v23 = vmul.f32 %v477_v0, %v457_v19  ;;  %v487_v24 = vmul.f32 %v481_v3, %v457_v19  ;;  %v488_v25 = vmul.f32 %v485_v4, %v457_v19  ;;  %v560_v28 = vmul.f32 %v551_v10, %v531_v20 }
  0x98   : > { %v561_v29 = vmul.f32 %v555_v11, %v531_v20  ;;  %v562_v34 = vmul.f32 %v559_v13, %v531_v20 }
  0x99   : > { %v489_v30 = vadd.f32 %v486_v23, %v449_v14  ;;  %v490_v32 = vadd.f32 %v487_v24, %v450_v15  ;;  %v491_v33 = vadd.f32 %v488_v25, %v451_v18 }
  0x9a   : > { %v1684_v35 = vpop.permute.xlu0 %638 }
  0x9b   : > { %v570_v36 = vpop.permute.xlu1 %569  ;;  %v526_v37 = vadd.f32 %v523_v22, %v489_v30  ;;  %v527_v46 = vadd.f32 %v524_v26, %v490_v32  ;;  %v528_v47 = vadd.f32 %v525_v27, %v491_v33 }
  0x9d   : > { %v563_v48 = vadd.f32 %v560_v28, %v526_v37  ;;  %v564_v49 = vadd.f32 %v561_v29, %v527_v46  ;;  %v565_v50 = vadd.f32 %v562_v34, %v528_v47 }
  0x9e   : > { %v626_v58 = vpop.permute.xlu0 %625 }
  0x9f   : > { %v572_v51 = vadd.f32 %v570_v36, %v563_v48  ;;  %v573_v52 = vadd.f32 %v570_v36, %v564_v49  ;;  %v574_v53 = vadd.f32 %v570_v36, %v565_v50 }
  0xa0   : > { %v1686_v54 = vpop.permute.xlu1 %684 }
  0xa1   : > { %v575_v55 = vadd.f32 3.0, %v572_v51  ;;  %v576_v56 = vadd.f32 3.0, %v573_v52  ;;  %v577_v57 = vadd.f32 3.0, %v574_v53 }
  0xa2   : > { %v1688_v4 = vpop.permute.xlu0 %730 }
  0xa3   : > { %v578_v59 = vmax.f32 %v575_v55, 0.0  ;;  %v579_v60 = vmax.f32 %v576_v56, 0.0  ;;  %v580_v61 = vmax.f32 %v577_v57, 0.0 }
  0xa4   : > { %v628_v62 = vpop.permute.xlu1 %627 }
  0xa5   : > { %v581_v63 = vmin.f32 %v578_v59, 6.0  ;;  %v582_v0 = vmin.f32 %v579_v60, 6.0  ;;  %v583_v3 = vmin.f32 %v580_v61, 6.0  ;;  %v630_v30 = vsel %vm629_vm1, %v626_v58, %v628_v62 }
  0xa7   : > { %v584_v8 = vmul.f32 %v581_v63, %v572_v51  ;;  %v585_v9 = vmul.f32 %v582_v0, %v573_v52  ;;  %v586_v10 = vmul.f32 %v583_v3, %v574_v53  ;;  %v754_v18 = vpop.permute.xlu0 %753 }
  0xa8   : > { %v672_v11 = vpop.permute.xlu1 %671 }
  0xa9   : > { %v1690_v13 = vmul.f32 0.16666667, %v584_v8  ;;  %v1692_v14 = vmul.f32 0.16666667, %v585_v9  ;;  %v1694_v15 = vmul.f32 0.16666667, %v586_v10 }
  0xab   : > { %v636_v19 = vmul.f32 %v628_v62, %v1694_v15  ;;  %v756_v20 = vmul.f32 %v754_v18, %v1690_v13  ;;  %v757_v22 = vmul.f32 %v754_v18, %v1692_v14  ;;  %v634_v25 = vmul.f32 %v626_v58, %v1690_v13 }
  0xac   : > { %v674_v23 = vpop.permute.xlu1 %673  ;;  %v758_v27 = vmul.f32 %v754_v18, %v1694_v15  ;;  %v635_v33 = vmul.f32 %v630_v30, %v1692_v14  ;;  %v800_v46 = vpop.permute.xlu0 %799  ;;  %v680_v47 = vmul.f32 %v672_v11, %v1690_v13 }
  0xad   : > { %v676_v24 = vsel %vm675_vm0, %v672_v11, %v674_v23  ;;  %764 = vrot.lane.b32.xlu0 %v757_v22, %s1431_s20  ;;  %762 = vrot.lane.b32.xlu1 %v756_v20, %s1431_s20  ;;  %v643_v26 = vmul.f32 %v1684_v35, %v636_v19  ;;  %v641_v32 = vmul.f32 %v1684_v35, %v634_v25 }
  0xae   : > { %v681_v28 = vmul.f32 %v676_v24, %v1692_v14  ;;  %v642_v51 = vmul.f32 %v1684_v35, %v635_v33  ;;  %v687_v53 = vmul.f32 %v1686_v54, %v680_v47  ;;  %v682_v55 = vmul.f32 %v674_v23, %v1694_v15 }
  0xb0   : > { %v718_v29 = vpop.permute.xlu1 %717  ;;  %v688_v37 = vmul.f32 %v1686_v54, %v681_v28  ;;  %v789_v52 = vpop.permute.xlu0 %788  ;;  %v689_v60 = vmul.f32 %v1686_v54, %v682_v55 }
  0xb1   : > { %651 = vrot.lane.b32.xlu0 %v643_v26, %s1432_s29  ;;  %766 = vrot.lane.b32.xlu1 %v758_v27, %s1431_s20  ;;  %v726_v34 = vmul.f32 %v718_v29, %v1690_v13  ;;  %v797_v61 = vmul.f32 %v789_v52, %v1694_v15 }
  0xb3   : > { %v733_v48 = vmul.f32 %v1688_v4, %v726_v34  ;;  %v804_v8 = vmul.f32 %v800_v46, %v797_v61 }
  0xb4   : > { %v720_v36 = vpop.permute.xlu1 %719  ;;  %v833_v0 = vpop.permute.xlu0 %832 }
  0xb5   : > { %695 = vrot.lane.b32.xlu0 %v688_v37, %s1433_s15  ;;  %647 = vrot.lane.b32.xlu1 %v641_v32, %s1432_s29  ;;  %v728_v49 = vmul.f32 %v720_v36, %v1694_v15  ;;  %v722_v58 = vsel %vm721_vm2, %v718_v29, %v720_v36  ;;  %v841_v24 = vmul.f32 %v833_v0, %v1690_v13 }
  0xb6   : > { %v727_v62 = vmul.f32 %v722_v58, %v1692_v14 }
  0xb7   : > { %v735_v56 = vmul.f32 %v1688_v4, %v728_v49 }
  0xb8   : > { %v846_v50 = vpop.permute.xlu1 %845  ;;  %v734_v11 = vmul.f32 %v1688_v4, %v727_v62  ;;  %v938_v19 = vpop.permute.xlu0 %937 }
  0xb9   : > { %739 = vrot.lane.b32.xlu0 %v733_v48, %s1434_s16  ;;  %649 = vrot.lane.b32.xlu1 %v642_v51, %s1432_s29  ;;  %v848_v25 = vmul.f32 %v846_v50, %v841_v24 }
  0xbc   : > { %v787_v57 = vpop.permute.xlu1 %786  ;;  %v925_v27 = vpop.permute.xlu0 %924 }
  0xbd   : > { %v795_v59 = vmul.f32 %v787_v57, %v1690_v13  ;;  %743 = vrot.lane.b32.xlu0 %v735_v56, %s1434_s16  ;;  %693 = vrot.lane.b32.xlu1 %v687_v53, %s1433_s15  ;;  %v791_v3 = vsel %vm790_vm3, %v787_v57, %v789_v52  ;;  %v933_v30 = vmul.f32 %v925_v27, %v1690_v13 }
  0xbe   : > { %v796_v9 = vmul.f32 %v791_v3, %v1692_v14 }
  0xbf   : > { %v802_v35 = vmul.f32 %v800_v46, %v795_v59  ;;  %v940_v37 = vmul.f32 %v938_v19, %v933_v30 }
  0xc0   : > { %v892_v63 = vpop.permute.xlu1 %891  ;;  %v803_v22 = vmul.f32 %v800_v46, %v796_v9  ;;  %v608_v55 = vpop.permute.xlu0 %607  ;;  %v591_v9 = vld [vmem:[%s1870_s1] ss:$8 sm:$0x3] }
  0xc1   : > { %808 = vrot.lane.b32.xlu0 %v802_v35, %s1435_s18  ;;  %697 = vrot.lane.b32.xlu1 %v689_v60, %s1433_s15 }
  0xc4   : > { %v835_v10 = vpop.permute.xlu1 %834  ;;  %v1739_v56 = vpop.permute.xlu0 %962 }
  0xc5   : > { %v837_v18 = vsel %vm836_vm4, %v833_v0, %v835_v10  ;;  %812 = vrot.lane.b32.xlu0 %v804_v8, %s1435_s18  ;;  %741 = vrot.lane.b32.xlu1 %v734_v11, %s1434_s16  ;;  %v843_v26 = vmul.f32 %v835_v10, %v1694_v15  ;;  %v596_v10 = vrot.slane %v591_v9, %v1563_v7 }
  0xc6   : > { %v842_v54 = vmul.f32 %v837_v18, %v1692_v14  ;;  %v600_v11 = vrot.slane %v591_v9, %v1577_v12 }
  0xc7   : > { %v850_v32 = vmul.f32 %v846_v50, %v843_v26 }
  0xc8   : > { %v879_v20 = vpop.permute.xlu1 %878  ;;  %v849_v23 = vmul.f32 %v846_v50, %v842_v54 }
  0xc9   : > { %810 = vrot.lane.b32.xlu1 %v803_v22, %s1435_s18  ;;  %v887_v33 = vmul.f32 %v879_v20, %v1690_v13 }
  0xca   : > { %856 = vrot.lane.b32.xlu0 %v849_v23, %s1436_s19 }
  0xcb   : > { %v894_v46 = vmul.f32 %v892_v63, %v887_v33 }
  0xcc   : > { %v881_v4 = vpop.permute.xlu1 %880 }
  0xcd   : > { %v883_v28 = vsel %vm882_vm5, %v879_v20, %v881_v4  ;;  %854 = vrot.lane.b32.xlu1 %v848_v25, %s1436_s19  ;;  %v889_v47 = vmul.f32 %v881_v4, %v1694_v15  ;;  %v604_v20 = vmul.f32 %v600_v11, %v1692_v14 }
  0xce   : > { %v888_v29 = vmul.f32 %v883_v28, %v1692_v14 }
  0xcf   : > { %v896_v51 = vmul.f32 %v892_v63, %v889_v47  ;;  %v611_v26 = vmul.f32 %v608_v55, %v604_v20 }
  0xd0   : > { %v895_v34 = vmul.f32 %v892_v63, %v888_v29  ;;  %v927_v36 = vpop.permute.xlu1 %926 }
  0xd1   : > { %858 = vrot.lane.b32.xlu1 %v850_v32, %s1436_s19  ;;  %v935_v48 = vmul.f32 %v927_v36, %v1694_v15  ;;  %v929_v49 = vsel %vm928_vm6, %v925_v27, %v927_v36 }
  0xd2   : > { %902 = vrot.lane.b32.xlu0 %v895_v34, %s1437_s26  ;;  %v934_v50 = vmul.f32 %v929_v49, %v1692_v14 }
  0xd3   : > { %v942_v52 = vmul.f32 %v938_v19, %v935_v48 }
  0xd4   : > { %v941_v53 = vmul.f32 %v938_v19, %v934_v50  ;;  %v603_v19 = vmul.f32 %v596_v10, %v1690_v13 }
  0xd5   : > { %900 = vrot.lane.b32.xlu1 %v894_v46, %s1437_s26 }
  0xd6   : > { %946 = vrot.lane.b32.xlu0 %v940_v37, %s1438_s28  ;;  %v610_v25 = vmul.f32 %v608_v55, %v603_v19 }
  0xd9   : > { %904 = vrot.lane.b32.xlu1 %v896_v51, %s1437_s26 }
  0xda   : > { %950 = vrot.lane.b32.xlu0 %v942_v52, %s1438_s28 }
  0xdd   : > { %948 = vrot.lane.b32.xlu1 %v941_v53, %s1438_s28  ;;  %s1263_s28 = sshll.u32 %s1526_s25, 7  ;;  %s1439_s25 = smov [#allocation2]  }
  0xde   : > { %s1811_s18 = scalar_lea.hbm %s1865_s12, %s1263_s28 }
 0x11f   : > { %v765_v57 = vpop.permute.xlu0 %764  ;;  %v763_v58 = vpop.permute.xlu1 %762 }
 0x120   : > { %v769_v48 = vsel %vm768_vm10, %v763_v58, %v765_v57 }
 0x123   : > { %v652_v59 = vpop.permute.xlu0 %651  ;;  %v767_v35 = vpop.permute.xlu1 %766 }
 0x124   : > { %v770_v49 = vsel %vm768_vm10, %v765_v57, %v767_v35 }
 0x127   : > { %v696_v15 = vpop.permute.xlu0 %695  ;;  %v648_v60 = vpop.permute.xlu1 %647 }
 0x12b   : > { %v740_v61 = vpop.permute.xlu0 %739  ;;  %v650_v62 = vpop.permute.xlu1 %649 }
 0x12c   : > { %v654_v23 = vsel %vm653_vm7, %v648_v60, %v650_v62  ;;  %v655_v24 = vsel %vm653_vm7, %v650_v62, %v652_v59 }
 0x12d   : > { %v658_v28 = vadd.f32 %v654_v23, %v610_v25  ;;  %v659_v29 = vadd.f32 %v655_v24, %v611_v26 }
 0x12f   : > { %v744_v0 = vpop.permute.xlu0 %743  ;;  %v694_v63 = vpop.permute.xlu1 %693 }
 0x130   : > { %v700_v4 = vsel %vm699_vm8, %v694_v63, %v696_v15 }
 0x131   : > { %v704_v36 = vadd.f32 %v700_v4, %v658_v28 }
 0x133   : > { %v809_v3 = vpop.permute.xlu0 %808  ;;  %v698_v8 = vpop.permute.xlu1 %697 }
 0x134   : > { %v701_v27 = vsel %vm699_vm8, %v696_v15, %v698_v8 }
 0x135   : > { %v705_v37 = vadd.f32 %v701_v27, %v659_v29 }
 0x137   : > { %v742_v18 = vpop.permute.xlu1 %741  ;;  %v813_v54 = vpop.permute.xlu0 %812 }
 0x138   : > { %v746_v33 = vsel %vm745_vm9, %v740_v61, %v742_v18  ;;  %v747_v34 = vsel %vm745_vm9, %v742_v18, %v744_v0 }
 0x139   : > { %v750_v13 = vadd.f32 %v746_v33, %v704_v36  ;;  %v751_v14 = vadd.f32 %v747_v34, %v705_v37  ;;  %v1015_v34 = vld [vmem:[%s1863_s10] sm:$0xf] }
 0x13b   : > { %v811_v22 = vpop.permute.xlu1 %810  ;;  %v774_v51 = vadd.f32 %v770_v49, %v751_v14  ;;  %v773_v50 = vadd.f32 %v769_v48, %v750_v13 }
 0x13c   : > { %v857_v30 = vpop.permute.xlu0 %856  ;;  %v815_v53 = vsel %vm814_vm11, %v809_v3, %v811_v22  ;;  %v816_v55 = vsel %vm814_vm11, %v811_v22, %v813_v54 }
 0x13d   : > { %v819_v61 = vadd.f32 %v815_v53, %v773_v50  ;;  %v820_v62 = vadd.f32 %v816_v55, %v774_v51  ;;  %v993_v51 = vld [vmem:[%s1861_s8] sm:$0xff]  ;;  %v1153_v55 = vcombine.high %v1629_v39, %v1629_v39 }
 0x13f   : > { %v855_v32 = vpop.permute.xlu1 %854 }
 0x140   : > { %v861_v15 = vsel %vm860_vm12, %v855_v32, %v857_v30 }
 0x141   : > { %v865_v9 = vadd.f32 %v861_v15, %v819_v61 }
 0x143   : > { %v859_v46 = vpop.permute.xlu1 %858 }
 0x144   : > { %v903_v47 = vpop.permute.xlu0 %902  ;;  %v862_v60 = vsel %vm860_vm12, %v857_v30, %v859_v46 }
 0x145   : > { %v866_v10 = vadd.f32 %v862_v60, %v820_v62 }
 0x147   : > { %v901_v52 = vpop.permute.xlu1 %900 }
 0x148   : > { %v947_v59 = vpop.permute.xlu0 %946  ;;  %v907_v63 = vsel %vm906_vm13, %v901_v52, %v903_v47 }
 0x149   : > { %v911_v58 = vadd.f32 %v907_v63, %v865_v9 }
 0x14b   : > { %v905_v0 = vpop.permute.xlu1 %904 }
 0x14c   : > { %v908_v8 = vsel %vm906_vm13, %v903_v47, %v905_v0  ;;  %v951_v35 = vpop.permute.xlu0 %950 }
 0x14d   : > { %v912_v57 = vadd.f32 %v908_v8, %v866_v10 }
 0x14f   : > { %v949_v11 = vpop.permute.xlu1 %948 }
 0x150   : > { %v953_v18 = vsel %vm952_vm14, %v947_v59, %v949_v11  ;;  %v954_v19 = vsel %vm952_vm14, %v949_v11, %v951_v35  ;;  %v1002_v59 = vld [vmem:[%s1862_s9] sm:$0xff] }
 0x151   : > { %v957_v3 = vadd.f32 %v953_v18, %v911_v58  ;;  %v958_v54 = vadd.f32 %v954_v19, %v912_v57 }
 0x153   : > { %v965_v20 = vadd.f32 %v1739_v56, %v957_v3  ;;  %v966_v22 = vadd.f32 %v1739_v56, %v958_v54 }
 0x155   : > { %v967_v23 = vadd.f32 3.0, %v965_v20  ;;  %v968_v24 = vadd.f32 3.0, %v966_v22 }
 0x157   : > { %v969_v25 = vmax.f32 %v967_v23, 0.0  ;;  %v970_v26 = vmax.f32 %v968_v24, 0.0 }
 0x159   : > { %v971_v4 = vmin.f32 %v969_v25, 6.0  ;;  %v972_v27 = vmin.f32 %v970_v26, 6.0 }
 0x15b   : > { %v973_v28 = vmul.f32 %v971_v4, %v965_v20  ;;  %v974_v29 = vmul.f32 %v972_v27, %v966_v22 }
 0x15d   : > { %v975_v30 = vmul.f32 0.16666667, %v973_v28  ;;  %v976_v32 = vmul.f32 0.16666667, %v974_v29 }
 0x15f   : > { %v977_v33 = vadd.f32 %v976_v32, %v975_v30 }
 0x161   : > { %978 = vadd.xlane.f32.xlu1 %v977_v33 }
 0x172   : > { %1018 = vperm.xlu1 %1341, %v1015_v34  }
 0x176   : > { %1342 = vset.pattern.permute.xlu1 %v1418_v6  ;;  %v981_v6 = vld [vmem:[%s1859_s6] sm:$0xff] }
 0x177   : > { %1034 = vperm.xlu1 %1342, %v1015_v34  }
 0x17b   : > { %1344 = vset.pattern.permute.xlu1 %v1417_v5 }
 0x17c   : > { %1066 = vperm.xlu1 %1344, %v1015_v34  }
 0x180   : > { %1345 = vset.pattern.permute.xlu1 %v1421_v17 }
 0x181   : > { %1082 = vperm.xlu1 %1345, %v1015_v34  }
 0x185   : > { %1347 = vset.pattern.permute.xlu1 %v1420_v16 }
 0x186   : > { %1114 = vperm.xlu1 %1347, %v1015_v34  }
 0x18a   : > { %1348 = vset.pattern.permute.xlu1 %v1429_v31  ;;  %v990_v31 = vld [vmem:[%s1860_s7] sm:$0x1] }
 0x18b   : > { %1130 = vperm.xlu1 %1348, %v1015_v34  }
 0x18f   : > { %1154 = vrot.lane.b32.xlu1 %v1629_v39, %s1431_s20  ;;  %v1145_v39 = vld [vmem:[%s1864_s11] sm:$0xf] }
 0x193   : > { %1156 = vrot.lane.b32.xlu1 %v1153_v55, %s1431_s20 }
 0x1ee   : > { %v979_v56 = vpop.xlane.xlu1 %978 }
 0x1ef   : > { %v980_v36 = vmul.f32 0.00390625, %v979_v56 }
 0x1f1   : > { %v982_v5 = vmul.f32 %v981_v6, %v980_v36 }
 0x1f2   : > { %v1019_v8 = vpop.permute.xlu1 %1018 }
 0x1f3   : > { %v983_v37 = vsel %vm675_vm0, %v982_v5, 0.0 }
 0x1f4   : > { %v984_v17 = vrot.slane %v983_v37, 4 }
 0x1f6   : > { %v985_v13 = vadd.f32 %v984_v17, %v983_v37  ;;  %v1035_v9 = vpop.permute.xlu1 %1034 }
 0x1f8   : > { %v986_v14 = vrot.slane %v985_v13, 2 }
 0x1fa   : > { %v987_v16 = vadd.f32 %v986_v14, %v985_v13 }
 0x1fb   : > { %v1067_v10 = vpop.permute.xlu1 %1066 }
 0x1fc   : > { %v988_v46 = vrot.slane %v987_v16, 1 }
 0x1fe   : > { %v989_v47 = vadd.f32 %v988_v46, %v987_v16 }
 0x200   : > { %v991_v48 = vadd.f32 %v990_v31, %v989_v47  ;;  %v1083_v58 = vpop.permute.xlu1 %1082 }
 0x202   : > { %v992_v49 = vmax.f32 %v991_v48, 0.0 }
 0x204   : > { %v997_v50 = vrot.slane %v992_v49, %v1563_v7 }
 0x206   : > { %v998_v52 = vmul.f32 %v997_v50, %v993_v51 }
 0x208   : > { %v999_v53 = vsel %vm675_vm0, %v998_v52, 0.0 }
 0x209   : > { %1000 = vadd.xlane.f32.xlu0 %v999_v53 }
 0x296   : > { %v1001_v15 = vpop.xlane.xlu0 %1000 }
 0x297   : > { %v1003_v60 = vadd.f32 %v1002_v59, %v1001_v15 }
 0x299   : > { %v1004_v61 = vadd.f32 3.0, %v1003_v60 }
 0x29b   : > { %v1005_v62 = vmax.f32 %v1004_v61, 0.0 }
 0x29d   : > { %v1006_v0 = vmin.f32 %v1005_v62, 6.0 }
 0x29f   : > { %v1007_v63 = vmul.f32 0.16666667, %v1006_v0 }
 0x2a1   : > { %1010 = vperm.xlu0 %1340, %v1007_v63  }
 0x2a5   : > { %1343 = vset.pattern.permute.xlu0 %v1415_v1 }
 0x2a6   : > { %1050 = vperm.xlu0 %1343, %v1015_v34  }
 0x2aa   : > { %1346 = vset.pattern.permute.xlu0 %v1423_v21 }
 0x2ab   : > { %1098 = vperm.xlu0 %1346, %v1015_v34  }
 0x2af   : > { %1349 = vset.pattern.permute.xlu0 %v1416_v2  ;;  %v1115_v2 = vpop.permute.xlu1 %1114 }
 0x2b0   : > { %1148 = vperm.xlu0 %1349, %v1145_v39  }
 0x2b4   : > { %1158 = vrot.lane.b32.xlu0 %v1631_v40, %s1431_s20  ;;  %s404_s20 = sand.u32 1, %s1405_s22  }
 0x2b5   : > { %s1249_s26 = sshll.u32 %s404_s20, 3  ;;  %s1172_s19 = scalar_lea.sflag [#allocation3], %s404_s20 }
 0x2b6   : > { %s406_s17 = scalar_lea.vmem [#allocation2], %s1249_s26  ;;  %s1355_s26 = sshll.u32 %s1439_s25, 4  ;;  %s1356_s26 = int_to_ptr.vmem [resolvable:$false] %s1355_s26 }
 0x2b7   : > { %s1186_s29 = sshll.u32 %s406_s17, 4  ;;  %s1357_s1 = scalar_lea.vmem %s1356_s26, 256  ;;  %s1813_s29 = int_to_ptr.vmem [resolvable:$true] %s1186_s29 }
 0x2b8   : > { %s1351_s0 = scalar_lea.vmem %s1813_s29, 128  ;;  %p1358_p0 = scmp.lt.s32.totalorder %s1813_s29, %s1356_s26 }
 0x2b9   : > { %p1352_p11 = scmp.ne.s32.totalorder %s1813_s29, %s1351_s0  ;;  %p1359_p1 = scmp.lt.s32.totalorder %s1357_s1, %s1351_s0 }
 0x2bb   : > { %p1353_p12 = pnand %p1352_p11, %p1543_p5  ;;  %p1360_p2 = por %p1359_p1, %p1358_p0 }
 0x2bd   : > { %p1354_p13 = pneg %p1353_p12 }
 0x2bf   : > { %p1361_p3 = pnand %p1360_p2, %p1354_p13 }
 0x320   : > { %v1011_v57 = vpop.permute.xlu0 %1010 }
 0x321   : > { %v1013_v1 = vmul.f32 %v1011_v57, %v975_v30  ;;  %v1014_v35 = vmul.f32 %v1011_v57, %v976_v32  ;;  %v1131_v30 = vpop.permute.xlu1 %1130 }
 0x323   : > { %v1024_v21 = vrot.slane %v1013_v1, %v1563_v7  ;;  %v1028_v11 = vrot.slane %v1014_v35, %v1563_v7  ;;  %v1040_v18 = vrot.slane %v1013_v1, %v1577_v12  ;;  %v1044_v19 = vrot.slane %v1014_v35, %v1577_v12 }
 0x324   : > { %v1056_v54 = vrot.slane %v1013_v1, %v1634_v41  ;;  %v1060_v40 = vrot.slane %v1014_v35, %v1634_v41  ;;  %v1072_v20 = vrot.slane %v1013_v1, %v1643_v44  ;;  %v1076_v22 = vrot.slane %v1014_v35, %v1643_v44 }
 0x325   : > { %v1051_v3 = vpop.permute.xlu0 %1050  ;;  %v1029_v23 = vmul.f32 %v1024_v21, %v1019_v8  ;;  %v1030_v24 = vmul.f32 %v1028_v11, %v1019_v8  ;;  %v1045_v25 = vmul.f32 %v1040_v18, %v1035_v9  ;;  %v1046_v26 = vmul.f32 %v1044_v19, %v1035_v9  ;;  %v1155_v49 = vpop.permute.xlu1 %1154 }
 0x326   : > { %v1061_v4 = vmul.f32 %v1056_v54, %v1051_v3  ;;  %v1062_v7 = vmul.f32 %v1060_v40, %v1051_v3  ;;  %v1088_v12 = vrot.slane %v1013_v1, %v1627_v38  ;;  %v1092_v29 = vrot.slane %v1014_v35, %v1627_v38 }
 0x327   : > { %v1047_v27 = vadd.f32 %v1045_v25, %v1029_v23  ;;  %v1048_v28 = vadd.f32 %v1046_v26, %v1030_v24  ;;  %v1077_v41 = vmul.f32 %v1072_v20, %v1067_v10  ;;  %v1078_v34 = vmul.f32 %v1076_v22, %v1067_v10 }
 0x328   : > { %v1120_v44 = vrot.slane %v1013_v1, %v1640_v43  ;;  %v1124_v56 = vrot.slane %v1014_v35, %v1640_v43  ;;  %v1104_v36 = vrot.slane %v1013_v1, %v1637_v42  ;;  %v1108_v5 = vrot.slane %v1014_v35, %v1637_v42 }
 0x329   : > { %v1063_v32 = vadd.f32 %v1061_v4, %v1047_v27  ;;  %v1064_v33 = vadd.f32 %v1062_v7, %v1048_v28  ;;  %v1093_v13 = vmul.f32 %v1088_v12, %v1083_v58  ;;  %v1094_v14 = vmul.f32 %v1092_v29, %v1083_v58  ;;  %v1157_v62 = vpop.permute.xlu1 %1156 }
 0x32a   : > { %v1099_v6 = vpop.permute.xlu0 %1098  ;;  %v1136_v38 = vrot.slane %v1013_v1, %v1646_v45  ;;  %v1140_v16 = vrot.slane %v1014_v35, %v1646_v45  ;;  %v1125_v43 = vmul.f32 %v1120_v44, %v1115_v2  ;;  %v1126_v50 = vmul.f32 %v1124_v56, %v1115_v2 }
 0x32b   : > { %v1079_v37 = vadd.f32 %v1077_v41, %v1063_v32  ;;  %v1080_v17 = vadd.f32 %v1078_v34, %v1064_v33  ;;  %v1109_v47 = vmul.f32 %v1104_v36, %v1099_v6  ;;  %v1110_v48 = vmul.f32 %v1108_v5, %v1099_v6 }
 0x32c   : > { %v1141_v53 = vmul.f32 %v1136_v38, %v1131_v30  ;;  %v1142_v55 = vmul.f32 %v1140_v16, %v1131_v30  ;;  %v1160_v8 = vsel %vm768_vm10, %v1155_v49, %v1157_v62 }
 0x32d   : > { %v1095_v46 = vadd.f32 %v1093_v13, %v1079_v37  ;;  %v1096_v31 = vadd.f32 %v1094_v14, %v1080_v17 }
 0x32f   : > { %v1149_v51 = vpop.permute.xlu0 %1148  ;;  %v1111_v52 = vadd.f32 %v1109_v47, %v1095_v46  ;;  %v1112_v42 = vadd.f32 %v1110_v48, %v1096_v31 }
 0x331   : > { %v1127_v59 = vadd.f32 %v1125_v43, %v1111_v52  ;;  %v1128_v15 = vadd.f32 %v1126_v50, %v1112_v42 }
 0x333   : > { %v1159_v60 = vpop.permute.xlu0 %1158  ;;  %v1143_v61 = vadd.f32 %v1141_v53, %v1127_v59  ;;  %v1144_v45 = vadd.f32 %v1142_v55, %v1128_v15 }
 0x334   : > { %v1161_v0 = vsel %vm768_vm10, %v1157_v62, %v1159_v60 }
 0x335   : > { %v1151_v63 = vadd.f32 %v1149_v51, %v1143_v61  ;;  %v1152_v39 = vadd.f32 %v1149_v51, %v1144_v45 }
 0x337   : > { %v1164_v9 = vadd.f32 %v1160_v8, %v1151_v63  ;;  %v1165_v10 = vadd.f32 %v1161_v0, %v1152_v39 }
 0x339   : > { %v1168_v58 = vcombine.low %v1164_v9, %v1165_v10 }
 0x33b   : > { %1170 = vst [vmem:[%s406_s17] sm:$0xff] %v1168_v58 }
 0x33c   : > { %1364 = shalt.err (!%p1361_p3)
}
 0x33d   : > { %s1365_s20 = scalar_lea.hbm %s1811_s18, 128  ;;  %s1369_s15 = scalar_lea.hbm %s1865_s12, 256 }
 0x33e   : > { %p1366_p4 = scmp.ne.s32.totalorder %s1811_s18, %s1365_s20  ;;  %p1370_p9 = scmp.lt.u32.totalorder %s1811_s18, %s1865_s12 }
 0x33f   : > { %p1371_p10 = scmp.lt.u32.totalorder %s1369_s15, %s1365_s20  ;;  %p1373_p12 = scmp.lt.u32.totalorder %s1365_s20, %s1811_s18 }
 0x340   : > { %p1367_p7 = pnand %p1366_p4, %p1543_p5 }
 0x341   : > { %p1372_p11 = por %p1371_p10, %p1370_p9 }
 0x342   : > { %p1368_p8 = pneg %p1367_p7 }
 0x343   : > { %p1374_p13 = por %p1373_p12, %p1372_p11 }
 0x345   : > { %p1375_p0 = pnand %p1374_p13, %p1368_p8 }
 0x347   : > { %1378 = shalt.err (!%p1375_p0)
}
 0x348   : > { %1265 = dma.vmem_to_hbm [thread:$0]  (%p1543_p5), %s1813_s29, 128, %s1811_s18, %s1172_s19  }
 0x349 PF: > { %p1271_p1 = scmp.ge.s32.totalorder %s1413_s24, 2  ;;  %s1198_s0 = sand.u32 1, %s1401_s21  }
 0x34a   : > { %s1199_s1 = scalar_lea.sflag [#allocation3], %s1198_s0 }
 0x34b   : > { %p1268_p2 = pnand %p1271_p1, %p1547_p6 }
 0x34d   : > { %1396 = dma.done.wait (!%p1268_p2), %s1199_s1, 128  }
 0x34e   : > { %1398 = vsyncadd (!%p1268_p2), %s1199_s1, 4294967168  ;;  %p22_p3 = scmp.ge.s32.totalorder %s1530_s27, 4   ;;  %s1872_s21 = smov %s1405_s22 }
 0x34f   : > { %s1873_s22 = smov %s1409_s23  ;;  %s1874_s23 = smov %s1541_s30 }
 0x350   : > { %s1875_s24 = smov %s1530_s27  ;;  %24 = sbr.rel (!%p22_p3) target bundleno = 6 (0x6), region = 110 }
 0x357   :  { %1204 = vsyncpa [#allocation3], 1 }
 0x358   :  { %1206 = vsyncpa [#allocation3 + $0x1], 1 }

</bundles_post_ra>
